<compile_context>
chip_gen: v5e
topology: v5e:2x2
jax: 0.10.0
libtpu: 0.0.40
codegen_flags: <defaults>
</compile_context>

<pallas_src>
import jax
import jax.numpy as jnp
from jax import lax
from jax.experimental import pallas as pl
from jax.experimental.pallas import tpu as pltpu


def _fused_conv_kernel(pt_ref, w_ref, b_ref, o_ref):
    # pt_ref: (1, K1, TR)   bf16  im2col patches, K on sublanes, pixels on lanes
    # w_ref : (Cout, K1)    bf16  folded weight  (w2 @ w1), resident
    # b_ref : (Cout, 1)     f32   folded bias    (w2 @ b1 + b2), resident
    # o_ref : (1, Cout, TR) f32
    y = jnp.dot(w_ref[...], pt_ref[0], preferred_element_type=jnp.float32)  # (Cout, TR)
    y = y + b_ref[...]
    o_ref[0] = jnp.clip(y, 0.0, 6.0) - jnp.float32(1.1)                     # relu6 - 1.1


def model_forward(x_nchw, w1, b1, w2, b2, *, tr_max=1024):
    """Forward pass equivalent to the PyTorch Model. Returns NCHW f32."""
    N, Cin, H, W = x_nchw.shape
    Cmid, _, KH, KW = w1.shape
    Cout = w2.shape[0]
    stride, pad = 2, 1
    OH = (H + 2 * pad - KH) // stride + 1
    OW = (W + 2 * pad - KW) // stride + 1
    R = OH * OW                      # output pixels per image
    K1 = KH * KW * Cin               # conv1 contraction size (75)

    # --- fold conv2 (1x1) into conv1: exact, done once in f32 ---
    # k index = kh*KW*Cin + kw*Cin + cin (matches patch layout below)
    w1_t = jnp.transpose(w1, (0, 2, 3, 1)).reshape(Cmid, K1).astype(jnp.float32)
    w2_t = w2.reshape(Cout, Cmid).astype(jnp.float32)
    w_f = (w2_t @ w1_t).astype(jnp.bfloat16)                                  # (Cout, K1)
    b_f = (w2_t @ b1.astype(jnp.float32)
           + b2.astype(jnp.float32)).reshape(Cout, 1).astype(jnp.float32)     # (Cout, 1)

    # --- K-major bf16 im2col (input-sized, cheap); cast BEFORE slicing ---
    xb = x_nchw.astype(jnp.bfloat16)
    xp = jnp.pad(xb, ((0, 0), (0, 0), (pad, pad), (pad, pad)))
    slabs = []
    for kh in range(KH):
        for kw in range(KW):
            slabs.append(xp[:, :, kh:kh + stride * (OH - 1) + 1:stride,
                                  kw:kw + stride * (OW - 1) + 1:stride])
    patches_t = jnp.concatenate(slabs, axis=1).reshape(N, K1, R)              # bf16

    # --- pixel tiling: lane-dense (multiple of 128), guarantee >=2 grid steps ---
    r128 = ((R + 127) // 128) * 128
    tr = min(tr_max, r128)
    if N == 1 and r128 > 128:
        # split the pixel axis so v7x's second TensorCore / the pipeline has work
        tr = min(tr, ((r128 // 2 + 127) // 128) * 128)
    rp = ((R + tr - 1) // tr) * tr            # pad pixels to a multiple of tr
    if rp > R:
        patches_t = jnp.pad(patches_t, ((0, 0), (0, 0), (0, rp - R)))
    num_tiles = rp // tr
    grid = (N, num_tiles)

    cost = pl.CostEstimate(
        flops=2 * N * rp * Cout * K1,
        transcendentals=0,
        bytes_accessed=(N * K1 * rp * 2          # bf16 patches
                        + Cout * K1 * 2          # bf16 folded weight
                        + Cout * 4               # f32 folded bias
                        + N * Cout * rp * 4))    # f32 output

    out_flat = pl.pallas_call(
        _fused_conv_kernel,
        out_shape=jax.ShapeDtypeStruct((N, Cout, rp), jnp.float32),
        grid_spec=pltpu.PrefetchScalarGridSpec(
            num_scalar_prefetch=0,
            grid=grid,
            in_specs=[
                pl.BlockSpec((1, K1, tr), lambda n, t: (n, 0, t)),
                pl.BlockSpec((Cout, K1), lambda n, t: (0, 0)),
                pl.BlockSpec((Cout, 1), lambda n, t: (0, 0)),
            ],
            out_specs=pl.BlockSpec((1, Cout, tr), lambda n, t: (n, 0, t)),
        ),
        compiler_params=pltpu.CompilerParams(
            dimension_semantics=("parallel", "parallel"),
            allow_input_fusion=[True, False, False]),
        cost_estimate=cost,
    )(patches_t, w_f, b_f)

    if rp > R:
        out_flat = out_flat[:, :, :R]
    # (N, Cout, OH*OW) -> (N, Cout, OH, OW): trailing-dim split, no transpose
    return out_flat.reshape(N, Cout, OH, OW)


def _reference_forward(x_nchw, w1, b1, w2, b2):
    """Pure-JAX reference (lax conv, f32) for correctness."""
    dn = lax.conv_dimension_numbers(x_nchw.shape, w1.shape, ("NCHW", "OIHW", "NCHW"))
    v1 = lax.conv_general_dilated(x_nchw, w1, window_strides=(2, 2),
                                  padding=((1, 1), (1, 1)), dimension_numbers=dn)
    v1 = v1 + b1.reshape(1, -1, 1, 1)
    dn2 = lax.conv_dimension_numbers(v1.shape, w2.shape, ("NCHW", "OIHW", "NCHW"))
    v2 = lax.conv_general_dilated(v1, w2, window_strides=(1, 1),
                                  padding=((0, 0), (0, 0)), dimension_numbers=dn2)
    v2 = v2 + b2.reshape(1, -1, 1, 1)
    return jnp.clip(v2, 0.0, 6.0) - 1.1


if __name__ == "__main__":
    key = jax.random.PRNGKey(0)
    kx, k1, k2, k3, k4 = jax.random.split(key, 5)

    # Small shapes consistent with the module (Cin=3 fixed by conv1).
    N, Cin, H, W = 2, 3, 16, 16
    x = jax.random.normal(kx, (N, Cin, H, W), dtype=jnp.float32)

    # PyTorch conv shapes: OIHW.
    w1 = 0.05 * jax.random.normal(k1, (128, 3, 5, 5), dtype=jnp.float32)
    b1 = 0.05 * jax.random.normal(k2, (128,), dtype=jnp.float32)
    w2 = 0.05 * jax.random.normal(k3, (256, 128, 1, 1), dtype=jnp.float32)
    b2 = 0.05 * jax.random.normal(k4, (256,), dtype=jnp.float32)

    fwd = jax.jit(model_forward)
    out = jax.block_until_ready(fwd(x, w1, b1, w2, b2))
    ref = jax.block_until_ready(_reference_forward(x, w1, b1, w2, b2))

    assert out.shape == ref.shape, (out.shape, ref.shape)
    # single bf16-operand matmul with f32-folded weights vs pure-f32 reference
    max_err = float(jnp.max(jnp.abs(out - ref)))
    assert jnp.allclose(out, ref, atol=1e-2, rtol=1e-2), max_err

    print("KERNEL_OK")
</pallas_src>

<mosaic_0001>
module attributes {stable_mosaic.version = 11 : i64} {
  func.func @_fused_conv_kernel(%arg0: i32, %arg1: i32, %arg2: memref<1x75x128xbf16, #tpu.memory_space<vmem>>, %arg3: memref<256x75xbf16, #tpu.memory_space<vmem>>, %arg4: memref<256x1xf32, #tpu.memory_space<vmem>>, %arg5: memref<1x256x128xf32, #tpu.memory_space<vmem>>) attributes {dimension_semantics = [#tpu.dimension_semantics<parallel>, #tpu.dimension_semantics<parallel>], iteration_bounds = array<i64: 2, 1>, scalar_prefetch = 0 : i64, scratch_operands = 0 : i64, tpu.core_type = #tpu.core_type<tc>, window_params = [{transform_indices = @transform_0, window_bounds = array<i64: 1, 75, 128>}, {pipeline_mode = #tpu.pipeline_mode<synchronous>, transform_indices = @transform_1, window_bounds = array<i64: 256, 75>}, {pipeline_mode = #tpu.pipeline_mode<synchronous>, transform_indices = @transform_2, window_bounds = array<i64: 256, 1>}, {transform_indices = @transform_3, window_bounds = array<i64: 1, 256, 128>}]} {
    %c0 = arith.constant 0 : index
    %c0_0 = arith.constant 0 : index
    %0 = vector.load %arg3[%c0, %c0_0] : memref<256x75xbf16, #tpu.memory_space<vmem>>, vector<256x75xbf16>
    %c0_1 = arith.constant 0 : index
    %c0_2 = arith.constant 0 : index
    %c0_3 = arith.constant 0 : index
    %1 = vector.load %arg2[%c0_1, %c0_2, %c0_3] : memref<1x75x128xbf16, #tpu.memory_space<vmem>>, vector<1x75x128xbf16>
    %2 = vector.shape_cast %1 : vector<1x75x128xbf16> to vector<75x128xbf16>
    %cst = arith.constant dense<0.000000e+00> : vector<256x128xf32>
    %3 = tpu.matmul %0, %2, %cst {dimension_numbers = #tpu.dot_dimension_numbers<[1], [0], [0], [1], [0, 0, 1, 1], [], []>} : vector<256x75xbf16>, vector<75x128xbf16>, vector<256x128xf32> -> vector<256x128xf32>
    %c0_4 = arith.constant 0 : index
    %c0_5 = arith.constant 0 : index
    %4 = vector.load %arg4[%c0_4, %c0_5] : memref<256x1xf32, #tpu.memory_space<vmem>>, vector<256x1xf32>
    %5 = vector.broadcast %4 : vector<256x1xf32> to vector<256x128xf32>
    %6 = arith.addf %3, %5 : vector<256x128xf32>
    %cst_6 = arith.constant 0.000000e+00 : f32
    %cst_7 = arith.constant 6.000000e+00 : f32
    %7 = vector.broadcast %cst_6 : f32 to vector<256x128xf32>
    %8 = arith.maximumf %7, %6 : vector<256x128xf32>
    %9 = vector.broadcast %cst_7 : f32 to vector<256x128xf32>
    %10 = arith.minimumf %9, %8 : vector<256x128xf32>
    %cst_8 = arith.constant 1.100000e+00 : f32
    %11 = vector.broadcast %cst_8 : f32 to vector<256x128xf32>
    %12 = arith.subf %10, %11 : vector<256x128xf32>
    %c0_9 = arith.constant 0 : index
    %c0_10 = arith.constant 0 : index
    %c0_11 = arith.constant 0 : index
    %13 = vector.load %arg5[%c0_9, %c0_10, %c0_11] : memref<1x256x128xf32, #tpu.memory_space<vmem>>, vector<1x256x128xf32>
    %14 = vector.shape_cast %13 : vector<1x256x128xf32> to vector<256x128xf32>
    %15 = vector.shape_cast %12 : vector<256x128xf32> to vector<1x256x128xf32>
    tpu.vector_store %arg5[%c0_9, %c0_10, %c0_11], %15 {strides = array<i32>} : memref<1x256x128xf32, #tpu.memory_space<vmem>>, vector<1x256x128xf32>,
    return
  }
  func.func @transform_0(%arg0: i32, %arg1: i32) -> (i32, i32, i32) {
    %c0_i32 = arith.constant 0 : i32
    %c0_i32_0 = arith.constant 0 : i32
    return %arg0, %c0_i32, %arg1 : i32, i32, i32
  }
  func.func @transform_1(%arg0: i32, %arg1: i32) -> (i32, i32) {
    %c0_i32 = arith.constant 0 : i32
    %c0_i32_0 = arith.constant 0 : i32
    %c0_i32_1 = arith.constant 0 : i32
    return %c0_i32, %c0_i32_0 : i32, i32
  }
  func.func @transform_2(%arg0: i32, %arg1: i32) -> (i32, i32) {
    %c0_i32 = arith.constant 0 : i32
    %c0_i32_0 = arith.constant 0 : i32
    %c0_i32_1 = arith.constant 0 : i32
    return %c0_i32, %c0_i32_0 : i32, i32
  }
  func.func @transform_3(%arg0: i32, %arg1: i32) -> (i32, i32, i32) {
    %c0_i32 = arith.constant 0 : i32
    %c0_i32_0 = arith.constant 0 : i32
    return %arg0, %c0_i32, %arg1 : i32, i32, i32
  }
}

</mosaic_0001>

<bundles_post_ra>
// kernel: model_forward.2
= control target key start
LH: loop header
LB: loop body
LE: loop exit
PB: predicated region body
PF: predicated region fallthrough
CT: control target
= control target key end

     0   :  { %s1560_s17 = smov 0   ;;  %s1562_s18 = smov 0   ;;  %s1867_s0 = inlined_call_operand.vmem [shape: bf16[256,75], index: 0, kind: input, shape index: {}]   ;;  %s1868_s1 = inlined_call_operand.vmem [shape: f32[256,1], index: 1, kind: input, shape index: {}]   ;;  %s1869_s2 = inlined_call_operand.vmem [shape: bf16[2,75,49], index: 2, kind: input, shape index: {}]   ;;  %s1870_s3 = inlined_call_operand.<no memory space> [shape: bf16[], index: 3, kind: input, shape index: {}]   ;;  %s1871_s4 = inlined_call_operand.vmem [shape: f32[2,256,128], index: 4, kind: output, shape index: {}]  }
   0x1   :  { %v9_v0 = vstv %s1870_s3  ;;  %s1564_s19 = smov 0  }
   0x2   :  { %v1558_v1 = vunpack.i.l.bf16 %v9_v0 }
   0x3 LB: > { %s31_s3 = sadd.s32 1, %s1522_s18  ;;  %p1290_p0 = scmp.ge.s32.totalorder %s1526_s19, 1  ;;  %s1526_s19 = sphi %s1564_s19, %s19_s19   ;;  %s1522_s18 = sphi %s1562_s18, %s1873_s18   ;;  %s1518_s17 = sphi %s1560_s17, %s1872_s17  }
   0x4   : > { %p33_p1 = scmp.ge.s32.totalorder %s31_s3, 2  ;;  %p166_p2 = scmp.lt.s32.totalorder %s1526_s19, 3 }
   0x6   : > { %s1875_s3 = smov (%p33_p1, %s31_s3), 0  ;;  %p167_p3 = pnand %p1290_p0, %p166_p2 }
   0x8   : > { %170 = sbr.rel (%p167_p3) target bundleno = 257 (0x101), region = 32 }
   0xd   : > { %v633_v2 = vld [vmem:[%s1868_s1 + $0x20] sm:$0xff]  ;;  %v631_v3 = vld [vmem:[%s1868_s1 + $0x10] sm:$0xff]  ;;  %p200_p4 = scmp.lt.s32.totalorder %s1518_s17, 1  ;;  %v243_v5 = vlaneseq  ;;  %v1528_v6 = vmov 0   ;;  %v634_v10 = vld [vmem:[%s1868_s1 + $0x28] sm:$0xff]  ;;  %vm979_vm2 = vcmask 1044480  }
   0xe   : > { %v629_v4 = vld [vmem:[%s1868_s1] sm:$0xff]  ;;  %1503 = vset.pattern.permute.xlu2 %v1528_v6  ;;  %1502 = vset.pattern.permute.xlu1 %v1528_v6  ;;  %v632_v14 = vld [vmem:[%s1868_s1 + $0x18] sm:$0xff]  ;;  %v630_v15 = vld [vmem:[%s1868_s1 + $0x8] sm:$0xff]  ;;  %vm980_vm3 = vcmask 1045504   ;;  %v1529_v51 = vmov 65535   ;;  %vm930_vm4 = vcmask 613376  }
   0xf   : > { %1501 = vset.pattern.permute.xlu0 %v1528_v6  ;;  %683 = vperm.xlu2 %1503, %v633_v2   ;;  %s1877_s17 = smov (!%p200_p4, %s1518_s17), 1  ;;  %v570_v7 = vshrl.u32 %v243_v5, 7  ;;  %v244_v8 = vand.u32 127, %v243_v5  ;;  %v637_v43 = vld [vmem:[%s1868_s1 + $0x40] sm:$0xff]  ;;  %v636_v45 = vld [vmem:[%s1868_s1 + $0x38] sm:$0xff]  ;;  %v635_v46 = vld [vmem:[%s1868_s1 + $0x30] sm:$0xff] }
  0x10   : > { %673 = vperm.xlu1 %1502, %v631_v3   ;;  %663 = vperm.xlu0 %1501, %v629_v4   ;;  %s1474_s26 = smul.u32 40, %s1877_s17  ;;  %v981_v52 = vsel %vm979_vm2, 4294967295, %v1529_v51  ;;  %v640_v58 = vld [vmem:[%s1868_s1 + $0x58] sm:$0xff]  ;;  %v639_v59 = vld [vmem:[%s1868_s1 + $0x50] sm:$0xff]  ;;  %v638_v60 = vld [vmem:[%s1868_s1 + $0x48] sm:$0xff]  ;;  %s1437_s28 = sshll.u32 %s1877_s17, 8 }
  0x11   : > { %v571_v9 = vadd.s32 72, %v570_v7  ;;  %vm247_vm0 = vcmp.lt.s32.totalorder %v244_v8, 49  ;;  %v982_v56 = vsel %vm980_vm3, %v981_v52, 0  ;;  %v643_v0 = vld [vmem:[%s1868_s1 + $0x70] sm:$0xff]  ;;  %v642_v2 = vld [vmem:[%s1868_s1 + $0x68] sm:$0xff]  ;;  %v641_v3 = vld [vmem:[%s1868_s1 + $0x60] sm:$0xff] }
  0x12   : > { %s207_s5 = scalar_lea.vmem %s1869_s2, %s1474_s26  ;;  %v646_v6 = vld [vmem:[%s1868_s1 + $0x88] sm:$0xff]  ;;  %v645_v7 = vld [vmem:[%s1868_s1 + $0x80] sm:$0xff]  ;;  %v644_v8 = vld [vmem:[%s1868_s1 + $0x78] sm:$0xff] }
  0x13   : > { %v1301_v11 = vld [vmem:[%s207_s5 + $0x20] sm:$0xff]   ;;  %vm572_vm1 = vcmp.lt.s32.totalorder %v571_v9, 75  ;;  %v1299_v12 = vld [vmem:[%s207_s5 + $0x18] sm:$0xff]   ;;  %v1297_v13 = vld [vmem:[%s207_s5 + $0x10] sm:$0xff]  }
  0x14   : > { %v526_v16 = vunpack.c.l.bf16 %v1301_v11  ;;  %v563_v17 = vunpack.c.h.bf16 %v1301_v11  ;;  %v452_v18 = vunpack.c.l.bf16 %v1299_v12  ;;  %v489_v19 = vunpack.c.h.bf16 %v1299_v12  ;;  %v1295_v20 = vld [vmem:[%s207_s5 + $0x8] sm:$0xff]   ;;  %v230_v33 = vld [vmem:[%s207_s5] sm:$0xff]   ;;  %s1802_s5 = scalar_lea.vmem %s1871_s4, %s1437_s28 }
  0x15   : > { %v378_v21 = vunpack.c.l.bf16 %v1297_v13  ;;  %v415_v22 = vunpack.c.h.bf16 %v1297_v13  ;;  %v304_v23 = vunpack.c.l.bf16 %v1295_v20  ;;  %v341_v24 = vunpack.c.h.bf16 %v1295_v20  ;;  %v1438_v9 = vld [vmem:[%s1867_s0] sm:$0xff]  ;;  %v1443_v20 = vld [vmem:[%s1867_s0 + $0x28] sm:$0xff] }
  0x16   : > { %v543_v25 = vsel %vm247_vm0, %v526_v16, %v1558_v1  ;;  %v573_v26 = vsel %vm572_vm1, %v563_v17, %v1558_v1  ;;  %v469_v27 = vsel %vm247_vm0, %v452_v18, %v1558_v1  ;;  %v506_v28 = vsel %vm247_vm0, %v489_v19, %v1558_v1  ;;  %v1446_v11 = vld [vmem:[%s1867_s0 + $0x40] sm:$0xff]  ;;  %v652_v16 = vld [vmem:[%s1868_s1 + $0xb8] sm:$0xff]  ;;  %v651_v17 = vld [vmem:[%s1868_s1 + $0xb0] sm:$0xff] }
  0x17   : > { %688 = vperm.xlu2 %1503, %v634_v10   ;;  %v545_v29 = vpack.c.bf16 0.0, %v543_v25  ;;  %v580_v30 = vsel %vm247_vm0, %v573_v26, %v1558_v1  ;;  %v471_v31 = vpack.c.bf16 0.0, %v469_v27  ;;  %v508_v32 = vpack.c.bf16 0.0, %v506_v28  ;;  %v1442_v10 = vld [vmem:[%s1867_s0 + $0x20] sm:$0xff]  ;;  %v650_v18 = vld [vmem:[%s1868_s1 + $0xa8] sm:$0xff]  ;;  %v656_v28 = vld [vmem:[%s1868_s1 + $0xd8] sm:$0xff] }
  0x18   : > { %678 = vperm.xlu1 %1502, %v632_v14   ;;  %668 = vperm.xlu0 %1501, %v630_v15   ;;  %v582_v34 = vpack.c.bf16 0.0, %v580_v30  ;;  %v395_v35 = vsel %vm247_vm0, %v378_v21, %v1558_v1  ;;  %v432_v36 = vsel %vm247_vm0, %v415_v22, %v1558_v1  ;;  %v321_v37 = vsel %vm247_vm0, %v304_v23, %v1558_v1  ;;  %v1450_v12 = vld [vmem:[%s1867_s0 + $0x60] sm:$0xff]  ;;  %v648_v14 = vld [vmem:[%s1868_s1 + $0x98] sm:$0xff]  ;;  %v647_v15 = vld [vmem:[%s1868_s1 + $0x90] sm:$0xff] }
  0x19   : > { %548 = vst [vmem:[#allocation7 + $0x20] sm:$0xf] %v545_v29  ;;  %v397_v38 = vpack.c.bf16 0.0, %v395_v35  ;;  %v358_v39 = vsel %vm247_vm0, %v341_v24, %v1558_v1  ;;  %v434_v40 = vpack.c.bf16 0.0, %v432_v36  ;;  %v231_v41 = vunpack.c.l.bf16 %v230_v33  ;;  %v649_v13 = vld [vmem:[%s1868_s1 + $0xa0] sm:$0xff]  ;;  %v1439_v19 = vld [vmem:[%s1867_s0 + $0x8] sm:$0xff] }
  0x1a   : > { %585 = vst [vmem:[#allocation7 + $0x24] sm:$0xf] %v582_v34  ;;  %v267_v42 = vunpack.c.h.bf16 %v230_v33  ;;  %v323_v44 = vpack.c.bf16 0.0, %v321_v37  ;;  %v360_v47 = vpack.c.bf16 0.0, %v358_v39  ;;  %v1447_v21 = vld [vmem:[%s1867_s0 + $0x48] sm:$0xff]  ;;  %v655_v23 = vld [vmem:[%s1868_s1 + $0xd0] sm:$0xff] }
  0x1b   : > { %474 = vst [vmem:[#allocation7 + $0x18] sm:$0xf] %v471_v31  ;;  %v248_v48 = vsel %vm247_vm0, %v231_v41, %v1558_v1  ;;  %v1451_v22 = vld [vmem:[%s1867_s0 + $0x68] sm:$0xff]  ;;  %v653_v25 = vld [vmem:[%s1868_s1 + $0xc0] sm:$0xff]  ;;  %v1440_v29 = vld [vmem:[%s1867_s0 + $0x10] sm:$0xff] }
  0x1c   : > { %511 = vst [vmem:[#allocation7 + $0x1c] sm:$0xf] %v508_v32  ;;  %v284_v49 = vsel %vm247_vm0, %v267_v42, %v1558_v1  ;;  %v249_v50 = vpack.c.bf16 0.0, %v248_v48  ;;  %v654_v24 = vld [vmem:[%s1868_s1 + $0xc8] sm:$0xff]  ;;  %v657_v27 = vld [vmem:[%s1868_s1 + $0xe0] sm:$0xff]  ;;  %v1444_v30 = vld [vmem:[%s1867_s0 + $0x30] sm:$0xff] }
  0x1d   : > { %400 = vst [vmem:[#allocation7 + $0x10] sm:$0xf] %v397_v38  ;;  %v286_v53 = vpack.c.bf16 0.0, %v284_v49  ;;  %v658_v26 = vld [vmem:[%s1868_s1 + $0xe8] sm:$0xff]  ;;  %v1448_v31 = vld [vmem:[%s1867_s0 + $0x50] sm:$0xff]  ;;  %v660_v33 = vld [vmem:[%s1868_s1 + $0xf8] sm:$0xff] }
  0x1e   : > { %437 = vst [vmem:[#allocation7 + $0x14] sm:$0xf] %v434_v40  ;;  %v1452_v32 = vld [vmem:[%s1867_s0 + $0x70] sm:$0xff]  ;;  %v1441_v35 = vld [vmem:[%s1867_s0 + $0x18] sm:$0xff] }
  0x1f   : > { %703 = vperm.xlu2 %1503, %v637_v43   ;;  %326 = vst [vmem:[#allocation7 + $0x8] sm:$0xf] %v323_v44  ;;  %v659_v34 = vld [vmem:[%s1868_s1 + $0xf0] sm:$0xff]  ;;  %v1445_v36 = vld [vmem:[%s1867_s0 + $0x38] sm:$0xff] }
  0x20   : > { %698 = vperm.xlu1 %1502, %v636_v45   ;;  %693 = vperm.xlu0 %1501, %v635_v46   ;;  %v1385_v54 = vld [vmem:[#allocation7 + $0x20] sm:$0xf]  ;;  %363 = vst [vmem:[#allocation7 + $0xc] sm:$0xf] %v360_v47  ;;  %v1449_v37 = vld [vmem:[%s1867_s0 + $0x58] sm:$0xff] }
  0x21   : > { %v1458_v55 = vld [vmem:[#allocation7 + $0x20] sm:$0x30]  ;;  %252 = vst [vmem:[#allocation7] sm:$0xf] %v249_v50  ;;  %v1453_v38 = vld [vmem:[%s1867_s0 + $0x78] sm:$0xff] }
  0x22   : > { %v1386_v57 = vor.u32 %v1458_v55, %v1385_v54  ;;  %289 = vst [vmem:[#allocation7 + $0x4] sm:$0xf] %v286_v53 }
  0x23   : > { %v1457_v62 = vld [vmem:[#allocation7 + $0x18] sm:$0xff] }
  0x24   : > { %v984_v61 = vand.u32 %v1386_v57, %v982_v56 }
  0x25   : > { %v1456_v63 = vld [vmem:[#allocation7 + $0x10] sm:$0xff] }
  0x26   : > { %989 = vmatpush.bf16.msra.mxu0 %v984_v61  ;;  %1459 = vmatpush.bf16.msra.mxu1 %v984_v61 }
  0x27   : > { %718 = vperm.xlu2 %1503, %v640_v58   ;;  %1460 = vmatpush.bf16.msra.mxu2 %v984_v61  ;;  %v1455_v4 = vld [vmem:[#allocation7 + $0x8] sm:$0xff] }
  0x28   : > { %713 = vperm.xlu1 %1502, %v639_v59   ;;  %708 = vperm.xlu0 %1501, %v638_v60  }
  0x29   : > { %1461 = vmatpush.bf16.msra.mxu3 %v984_v61  ;;  %v1454_v5 = vld [vmem:[#allocation7] sm:$0xff] }
  0x2a   : > { %990 = vmatpush.bf16.msra.mxu0 %v1457_v62  ;;  %1462 = vmatpush.bf16.msra.mxu1 %v1457_v62 }
  0x2b   : > { %1463 = vmatpush.bf16.msra.mxu2 %v1457_v62 }
  0x2d   : > { %1464 = vmatpush.bf16.msra.mxu3 %v1457_v62 }
  0x2e   : > { %991 = vmatpush.bf16.msra.mxu0 %v1456_v63  ;;  %1465 = vmatpush.bf16.msra.mxu1 %v1456_v63 }
  0x2f   : > { %733 = vperm.xlu2 %1503, %v643_v0   ;;  %1466 = vmatpush.bf16.msra.mxu2 %v1456_v63 }
  0x30   : > { %728 = vperm.xlu1 %1502, %v642_v2   ;;  %723 = vperm.xlu0 %1501, %v641_v3  }
  0x31   : > { %1467 = vmatpush.bf16.msra.mxu3 %v1456_v63 }
  0x32   : > { %992 = vmatpush.bf16.msra.mxu0 %v1455_v4  ;;  %1468 = vmatpush.bf16.msra.mxu1 %v1455_v4 }
  0x33   : > { %1469 = vmatpush.bf16.msra.mxu2 %v1455_v4 }
  0x35   : > { %1470 = vmatpush.bf16.msra.mxu3 %v1455_v4 }
  0x36   : > { %993 = vmatpush.bf16.msra.mxu0 %v1454_v5  ;;  %1471 = vmatpush.bf16.msra.mxu1 %v1454_v5 }
  0x37   : > { %748 = vperm.xlu2 %1503, %v646_v6   ;;  %1472 = vmatpush.bf16.msra.mxu2 %v1454_v5 }
  0x38   : > { %743 = vperm.xlu1 %1502, %v645_v7   ;;  %738 = vperm.xlu0 %1501, %v644_v8  }
  0x39   : > { %1473 = vmatpush.bf16.msra.mxu3 %v1454_v5  ;;  %1387 = vmatmul.msk.bf16.vlgmr.msra.gmra.mxu0 %vm930_vm4, %v1438_v9 }
  0x3a   : > { %1391 = vmatmul.msk.bf16.vlgmr.msra.gmra.mxu1 %vm930_vm4, %v1442_v10  ;;  %1395 = vmatmul.msk.bf16.vlgmr.msra.gmra.mxu2 %vm930_vm4, %v1446_v11 }
  0x3c   : > { %1399 = vmatmul.msk.bf16.vlgmr.msra.gmra.mxu3 %vm930_vm4, %v1450_v12 }
  0x3f   : > { %763 = vperm.xlu2 %1503, %v649_v13  }
  0x40   : > { %758 = vperm.xlu1 %1502, %v648_v14   ;;  %753 = vperm.xlu0 %1501, %v647_v15  }
  0x47   : > { %778 = vperm.xlu2 %1503, %v652_v16  }
  0x48   : > { %773 = vperm.xlu1 %1502, %v651_v17   ;;  %768 = vperm.xlu0 %1501, %v650_v18  }
  0x49   : > { %1388 = vmatmul.msk.bf16.gmra.mxu0 %vm930_vm4, %v1439_v19 }
  0x4a   : > { %1392 = vmatmul.msk.bf16.gmra.mxu1 %vm930_vm4, %v1443_v20  ;;  %1396 = vmatmul.msk.bf16.gmra.mxu2 %vm930_vm4, %v1447_v21 }
  0x4c   : > { %1400 = vmatmul.msk.bf16.gmra.mxu3 %vm930_vm4, %v1451_v22 }
  0x4f   : > { %793 = vperm.xlu2 %1503, %v655_v23  }
  0x50   : > { %788 = vperm.xlu1 %1502, %v654_v24   ;;  %783 = vperm.xlu0 %1501, %v653_v25  }
  0x57   : > { %808 = vperm.xlu2 %1503, %v658_v26  }
  0x58   : > { %803 = vperm.xlu1 %1502, %v657_v27   ;;  %798 = vperm.xlu0 %1501, %v656_v28  }
  0x59   : > { %1389 = vmatmul.msk.bf16.gmra.mxu0 %vm930_vm4, %v1440_v29 }
  0x5a   : > { %1393 = vmatmul.msk.bf16.gmra.mxu1 %vm930_vm4, %v1444_v30  ;;  %1397 = vmatmul.msk.bf16.gmra.mxu2 %vm930_vm4, %v1448_v31 }
  0x5c   : > { %1401 = vmatmul.msk.bf16.gmra.mxu3 %vm930_vm4, %v1452_v32 }
  0x60   : > { %818 = vperm.xlu1 %1502, %v660_v33   ;;  %813 = vperm.xlu0 %1501, %v659_v34  }
  0x69   : > { %1390 = vmatmul.msk.bf16.gmra.mxu0 %vm930_vm4, %v1441_v35  ;;  %v1766_v39 = vpop.permute.xlu2 %683 }
  0x6a   : > { %1394 = vmatmul.msk.bf16.gmra.mxu1 %vm930_vm4, %v1445_v36  ;;  %1398 = vmatmul.msk.bf16.gmra.mxu2 %vm930_vm4, %v1449_v37 }
  0x6c   : > { %1402 = vmatmul.msk.bf16.gmra.mxu3 %vm930_vm4, %v1453_v38 }
  0x71   : > { %v1770_v42 = vpop.permute.xlu2 %688 }
  0x79   : > { %v704_v47 = vpop.permute.xlu2 %703 }
  0x81   : > { %v1780_v50 = vpop.permute.xlu2 %718 }
  0x82   : > { %v1768_v40 = vpop.permute.xlu1 %673  ;;  %v664_v41 = vpop.permute.xlu0 %663 }
  0x89   : > { %v1786_v53 = vpop.permute.xlu2 %733 }
  0x8a   : > { %v1772_v43 = vpop.permute.xlu1 %678  ;;  %v669_v44 = vpop.permute.xlu0 %668 }
  0x91   : > { %v749_v56 = vpop.permute.xlu2 %748 }
  0x92   : > { %v1774_v45 = vpop.permute.xlu1 %698  ;;  %v1776_v46 = vpop.permute.xlu0 %693 }
  0x99   : > { %v1797_v2 = vpop.permute.xlu2 %763 }
  0x9a   : > { %v1778_v48 = vpop.permute.xlu1 %713  ;;  %v709_v49 = vpop.permute.xlu0 %708 }
  0xa1   : > { %v1808_v24 = vpop.permute.xlu2 %778 }
  0xa2   : > { %v1782_v51 = vpop.permute.xlu1 %728  ;;  %v1784_v52 = vpop.permute.xlu0 %723 }
  0xaa   : > { %v744_v54 = vpop.permute.xlu1 %743  ;;  %v1788_v55 = vpop.permute.xlu0 %738 }
  0xb2   : > { %v1790_v57 = vpop.permute.xlu0 %753  ;;  %v1792_v58 = vpop.permute.xlu1 %758 }
  0xb6   : > { %v995_v59 = vpop.f32.mrf.mxu0 }
  0xb7   : > { %v996_v60 = vadd.f32 %v995_v59, %v664_v41  ;;  %v1015_v61 = vpop.f32.mrf.mxu1 }
  0xb8   : > { %v1016_v63 = vadd.f32 %v1015_v61, %v704_v47 }
  0xb9   : > { %v1075_v62 = vmax.f32 %v996_v60, 0.0 }
  0xba   : > { %v1795_v0 = vpop.permute.xlu0 %768  ;;  %v1083_v4 = vmax.f32 %v1016_v63, 0.0  ;;  %v1804_v7 = vpop.permute.xlu1 %773 }
  0xbb   : > { %v1107_v3 = vmin.f32 %v1075_v62, 6.0 }
  0xbc   : > { %v1115_v6 = vmin.f32 %v1083_v4, 6.0 }
  0xbd   : > { %v1403_v5 = vadd.f32 -1.1, %v1107_v3  ;;  %v1035_v8 = vpop.f32.mrf.mxu2 }
  0xbe   : > { %v997_v9 = vpop.f32.mrf.mxu0  ;;  %v1411_v10 = vadd.f32 -1.1, %v1115_v6  ;;  %v1036_v11 = vadd.f32 %v1035_v8, %v744_v54 }
  0xbf   : > { %1171 = vst [vmem:[%s1802_s5] sm:$0xff] %v1403_v5  ;;  %v1055_v12 = vpop.f32.mrf.mxu3  ;;  %v998_v13 = vadd.f32 %v997_v9, %v669_v44  ;;  %v1017_v14 = vpop.f32.mrf.mxu1 }
  0xc0   : > { %1179 = vst [vmem:[%s1802_s5 + $0x40] sm:$0xff] %v1411_v10  ;;  %v1091_v15 = vmax.f32 %v1036_v11, 0.0  ;;  %v1018_v17 = vadd.f32 %v1017_v14, %v709_v49  ;;  %v794_v5 = vpop.permute.xlu2 %793 }
  0xc1   : > { %v1076_v16 = vmax.f32 %v998_v13, 0.0 }
  0xc2   : > { %v784_v18 = vpop.permute.xlu0 %783  ;;  %v1123_v20 = vmin.f32 %v1091_v15, 6.0  ;;  %v1084_v22 = vmax.f32 %v1018_v17, 0.0  ;;  %v789_v32 = vpop.permute.xlu1 %788 }
  0xc3   : > { %v1056_v19 = vadd.f32 %v1055_v12, %v784_v18  ;;  %v1108_v21 = vmin.f32 %v1076_v16, 6.0 }
  0xc4   : > { %v1419_v25 = vadd.f32 -1.1, %v1123_v20  ;;  %v1116_v27 = vmin.f32 %v1084_v22, 6.0 }
  0xc5   : > { %v1099_v23 = vmax.f32 %v1056_v19, 0.0  ;;  %v1404_v26 = vadd.f32 -1.1, %v1108_v21  ;;  %v1037_v29 = vpop.f32.mrf.mxu2 }
  0xc6   : > { %v1000_v30 = vpop.f32.mrf.mxu0  ;;  %1187 = vst [vmem:[%s1802_s5 + $0x80] sm:$0xff] %v1419_v25  ;;  %v1412_v31 = vadd.f32 -1.1, %v1116_v27  ;;  %v1038_v33 = vadd.f32 %v1037_v29, %v749_v56 }
  0xc7   : > { %v1131_v28 = vmin.f32 %v1099_v23, 6.0  ;;  %v1057_v34 = vpop.f32.mrf.mxu3  ;;  %v1001_v35 = vadd.f32 %v1000_v30, %v1768_v40  ;;  %1172 = vst [vmem:[%s1802_s5 + $0x8] sm:$0xff] %v1404_v26  ;;  %v1020_v38 = vpop.f32.mrf.mxu1 }
  0xc8   : > { %v1058_v37 = vadd.f32 %v1057_v34, %v789_v32  ;;  %1180 = vst [vmem:[%s1802_s5 + $0x48] sm:$0xff] %v1412_v31  ;;  %v1092_v41 = vmax.f32 %v1038_v33, 0.0  ;;  %v1021_v47 = vadd.f32 %v1020_v38, %v1778_v48 }
  0xc9   : > { %v1427_v36 = vadd.f32 -1.1, %v1131_v28  ;;  %v1077_v44 = vmax.f32 %v1001_v35, 0.0 }
  0xca   : > { %v1100_v49 = vmax.f32 %v1058_v37, 0.0  ;;  %v1124_v54 = vmin.f32 %v1092_v41, 6.0  ;;  %v1085_v60 = vmax.f32 %v1021_v47, 0.0  ;;  %v799_v25 = vpop.permute.xlu0 %798 }
  0xcb   : > { %1195 = vst [vmem:[%s1802_s5 + $0xc0] sm:$0xff] %v1427_v36  ;;  %v1109_v59 = vmin.f32 %v1077_v44, 6.0 }
  0xcc   : > { %v1132_v56 = vmin.f32 %v1100_v49, 6.0  ;;  %v1420_v61 = vadd.f32 -1.1, %v1124_v54  ;;  %v1117_v62 = vmin.f32 %v1085_v60, 6.0  ;;  %v804_v54 = vpop.permute.xlu1 %803 }
  0xcd   : > { %v1405_v40 = vadd.f32 -1.1, %v1109_v59  ;;  %v1040_v3 = vpop.f32.mrf.mxu2 }
  0xce   : > { %v1428_v63 = vadd.f32 -1.1, %v1132_v56  ;;  %v1002_v4 = vpop.f32.mrf.mxu0  ;;  %1188 = vst [vmem:[%s1802_s5 + $0x88] sm:$0xff] %v1420_v61  ;;  %v1413_v6 = vadd.f32 -1.1, %v1117_v62  ;;  %v1041_v48 = vadd.f32 %v1040_v3, %v1790_v57 }
  0xcf   : > { %v1060_v8 = vpop.f32.mrf.mxu3  ;;  %v1003_v9 = vadd.f32 %v1002_v4, %v1772_v43  ;;  %v1022_v11 = vpop.f32.mrf.mxu1  ;;  %1173 = vst [vmem:[%s1802_s5 + $0x10] sm:$0xff] %v1405_v40 }
  0xd0   : > { %1196 = vst [vmem:[%s1802_s5 + $0xc8] sm:$0xff] %v1428_v63  ;;  %v1061_v10 = vadd.f32 %v1060_v8, %v794_v5  ;;  %v1093_v12 = vmax.f32 %v1041_v48, 0.0  ;;  %v1023_v14 = vadd.f32 %v1022_v11, %v1780_v50 }
  0xd1   : > { %v1078_v13 = vmax.f32 %v1003_v9, 0.0  ;;  %1181 = vst [vmem:[%s1802_s5 + $0x50] sm:$0xff] %v1413_v6 }
  0xd2   : > { %v1101_v15 = vmax.f32 %v1061_v10, 0.0  ;;  %v1125_v16 = vmin.f32 %v1093_v12, 6.0  ;;  %v1086_v18 = vmax.f32 %v1023_v14, 0.0 }
  0xd3   : > { %v1110_v17 = vmin.f32 %v1078_v13, 6.0  ;;  %v809_v13 = vpop.permute.xlu2 %808 }
  0xd4   : > { %v1133_v19 = vmin.f32 %v1101_v15, 6.0  ;;  %v1421_v57 = vadd.f32 -1.1, %v1125_v16  ;;  %v1118_v43 = vmin.f32 %v1086_v18, 6.0 }
  0xd5   : > { %v1406_v20 = vadd.f32 -1.1, %v1110_v17  ;;  %v1042_v22 = vpop.f32.mrf.mxu2 }
  0xd6   : > { %v1429_v21 = vadd.f32 -1.1, %v1133_v19  ;;  %v1005_v23 = vpop.f32.mrf.mxu0  ;;  %1189 = vst [vmem:[%s1802_s5 + $0x90] sm:$0xff] %v1421_v57  ;;  %v1414_v26 = vadd.f32 -1.1, %v1118_v43  ;;  %v1043_v50 = vadd.f32 %v1042_v22, %v1792_v58 }
  0xd7   : > { %v1062_v27 = vpop.f32.mrf.mxu3  ;;  %v1006_v28 = vadd.f32 %v1005_v23, %v1766_v39  ;;  %v1025_v30 = vpop.f32.mrf.mxu1  ;;  %1174 = vst [vmem:[%s1802_s5 + $0x18] sm:$0xff] %v1406_v20 }
  0xd8   : > { %1197 = vst [vmem:[%s1802_s5 + $0xd0] sm:$0xff] %v1429_v21  ;;  %v1063_v29 = vadd.f32 %v1062_v27, %v799_v25  ;;  %v1094_v31 = vmax.f32 %v1043_v50, 0.0  ;;  %v1026_v33 = vadd.f32 %v1025_v30, %v1784_v52 }
  0xd9   : > { %v1079_v32 = vmax.f32 %v1006_v28, 0.0  ;;  %1182 = vst [vmem:[%s1802_s5 + $0x58] sm:$0xff] %v1414_v26 }
  0xda   : > { %v1102_v34 = vmax.f32 %v1063_v29, 0.0  ;;  %v1126_v35 = vmin.f32 %v1094_v31, 6.0  ;;  %v1087_v37 = vmax.f32 %v1026_v33, 0.0  ;;  %v814_v29 = vpop.permute.xlu0 %813 }
  0xdb   : > { %v1111_v36 = vmin.f32 %v1079_v32, 6.0 }
  0xdc   : > { %v1134_v38 = vmin.f32 %v1102_v34, 6.0  ;;  %v1422_v58 = vadd.f32 -1.1, %v1126_v35  ;;  %v1119_v39 = vmin.f32 %v1087_v37, 6.0 }
  0xdd   : > { %v1407_v41 = vadd.f32 -1.1, %v1111_v36  ;;  %v1045_v47 = vpop.f32.mrf.mxu2 }
  0xde   : > { %v1430_v44 = vadd.f32 -1.1, %v1134_v38  ;;  %v1007_v49 = vpop.f32.mrf.mxu0  ;;  %1190 = vst [vmem:[%s1802_s5 + $0x98] sm:$0xff] %v1422_v58  ;;  %v1415_v59 = vadd.f32 -1.1, %v1119_v39  ;;  %v1046_v52 = vadd.f32 %v1045_v47, %v1797_v2 }
  0xdf   : > { %v1065_v60 = vpop.f32.mrf.mxu3  ;;  %v1008_v56 = vadd.f32 %v1007_v49, %v1770_v42  ;;  %v1027_v40 = vpop.f32.mrf.mxu1  ;;  %1175 = vst [vmem:[%s1802_s5 + $0x20] sm:$0xff] %v1407_v41 }
  0xe0   : > { %1198 = vst [vmem:[%s1802_s5 + $0xd8] sm:$0xff] %v1430_v44  ;;  %v1066_v61 = vadd.f32 %v1065_v60, %v804_v54  ;;  %v1095_v62 = vmax.f32 %v1046_v52, 0.0  ;;  %v1028_v3 = vadd.f32 %v1027_v40, %v1782_v51 }
  0xe1   : > { %v1080_v63 = vmax.f32 %v1008_v56, 0.0  ;;  %1183 = vst [vmem:[%s1802_s5 + $0x60] sm:$0xff] %v1415_v59  ;;  %v819_v59 = vpop.permute.xlu1 %818 }
  0xe2   : > { %v1103_v4 = vmax.f32 %v1066_v61, 0.0  ;;  %v1127_v5 = vmin.f32 %v1095_v62, 6.0  ;;  %v1088_v48 = vmax.f32 %v1028_v3, 0.0 }
  0xe3   : > { %v1112_v6 = vmin.f32 %v1080_v63, 6.0 }
  0xe4   : > { %v1135_v8 = vmin.f32 %v1103_v4, 6.0  ;;  %v1423_v2 = vadd.f32 -1.1, %v1127_v5  ;;  %v1120_v42 = vmin.f32 %v1088_v48, 6.0 }
  0xe5   : > { %v1408_v9 = vadd.f32 -1.1, %v1112_v6  ;;  %v1047_v11 = vpop.f32.mrf.mxu2 }
  0xe6   : > { %v1431_v10 = vadd.f32 -1.1, %v1135_v8  ;;  %v1010_v12 = vpop.f32.mrf.mxu0  ;;  %1191 = vst [vmem:[%s1802_s5 + $0xa0] sm:$0xff] %v1423_v2  ;;  %v1416_v14 = vadd.f32 -1.1, %v1120_v42  ;;  %v1048_v51 = vadd.f32 %v1047_v11, %v1795_v0 }
  0xe7   : > { %v1067_v15 = vpop.f32.mrf.mxu3  ;;  %v1011_v16 = vadd.f32 %v1010_v12, %v1776_v46  ;;  %v1030_v18 = vpop.f32.mrf.mxu1  ;;  %1176 = vst [vmem:[%s1802_s5 + $0x28] sm:$0xff] %v1408_v9 }
  0xe8   : > { %1199 = vst [vmem:[%s1802_s5 + $0xe0] sm:$0xff] %v1431_v10  ;;  %v1068_v17 = vadd.f32 %v1067_v15, %v809_v13  ;;  %v1096_v19 = vmax.f32 %v1048_v51, 0.0  ;;  %v1031_v20 = vadd.f32 %v1030_v18, %v1786_v53 }
  0xe9   : > { %v1081_v57 = vmax.f32 %v1011_v16, 0.0  ;;  %1184 = vst [vmem:[%s1802_s5 + $0x68] sm:$0xff] %v1416_v14 }
  0xea   : > { %v1104_v43 = vmax.f32 %v1068_v17, 0.0  ;;  %v1128_v21 = vmin.f32 %v1096_v19, 6.0  ;;  %v1089_v23 = vmax.f32 %v1031_v20, 0.0 }
  0xeb   : > { %v1113_v22 = vmin.f32 %v1081_v57, 6.0 }
  0xec   : > { %v1136_v25 = vmin.f32 %v1104_v43, 6.0  ;;  %v1424_v0 = vadd.f32 -1.1, %v1128_v21  ;;  %v1121_v46 = vmin.f32 %v1089_v23, 6.0 }
  0xed   : > { %v1409_v26 = vadd.f32 -1.1, %v1113_v22  ;;  %v1050_v27 = vpop.f32.mrf.mxu2 }
  0xee   : > { %v1432_v50 = vadd.f32 -1.1, %v1136_v25  ;;  %v1012_v28 = vpop.f32.mrf.mxu0  ;;  %1192 = vst [vmem:[%s1802_s5 + $0xa8] sm:$0xff] %v1424_v0  ;;  %v1417_v30 = vadd.f32 -1.1, %v1121_v46  ;;  %v1051_v53 = vadd.f32 %v1050_v27, %v1804_v7 }
  0xef   : > { %v1070_v31 = vpop.f32.mrf.mxu3  ;;  %v1013_v32 = vadd.f32 %v1012_v28, %v1774_v45  ;;  %v1032_v34 = vpop.f32.mrf.mxu1  ;;  %1177 = vst [vmem:[%s1802_s5 + $0x30] sm:$0xff] %v1409_v26 }
  0xf0   : > { %1200 = vst [vmem:[%s1802_s5 + $0xe8] sm:$0xff] %v1432_v50  ;;  %v1071_v33 = vadd.f32 %v1070_v31, %v814_v29  ;;  %v1097_v35 = vmax.f32 %v1051_v53, 0.0  ;;  %v1033_v37 = vadd.f32 %v1032_v34, %v1788_v55 }
  0xf1   : > { %v1082_v36 = vmax.f32 %v1013_v32, 0.0  ;;  %1185 = vst [vmem:[%s1802_s5 + $0x70] sm:$0xff] %v1417_v30 }
  0xf2   : > { %v1105_v38 = vmax.f32 %v1071_v33, 0.0  ;;  %v1129_v58 = vmin.f32 %v1097_v35, 6.0  ;;  %v1090_v39 = vmax.f32 %v1033_v37, 0.0 }
  0xf3   : > { %v1114_v41 = vmin.f32 %v1082_v36, 6.0 }
  0xf4   : > { %v1137_v7 = vmin.f32 %v1105_v38, 6.0  ;;  %v1425_v44 = vadd.f32 -1.1, %v1129_v58  ;;  %v1122_v47 = vmin.f32 %v1090_v39, 6.0 }
  0xf5   : > { %v1410_v45 = vadd.f32 -1.1, %v1114_v41  ;;  %v1052_v54 = vpop.f32.mrf.mxu2 }
  0xf6   : > { %v1433_v49 = vadd.f32 -1.1, %v1137_v7  ;;  %1193 = vst [vmem:[%s1802_s5 + $0xb0] sm:$0xff] %v1425_v44  ;;  %v1418_v52 = vadd.f32 -1.1, %v1122_v47  ;;  %v1053_v55 = vadd.f32 %v1052_v54, %v1808_v24 }
  0xf7   : > { %v1072_v60 = vpop.f32.mrf.mxu3  ;;  %1178 = vst [vmem:[%s1802_s5 + $0x38] sm:$0xff] %v1410_v45 }
  0xf8   : > { %1201 = vst [vmem:[%s1802_s5 + $0xf0] sm:$0xff] %v1433_v49  ;;  %v1073_v56 = vadd.f32 %v1072_v60, %v819_v59  ;;  %v1098_v61 = vmax.f32 %v1053_v55, 0.0 }
  0xf9   : > { %1186 = vst [vmem:[%s1802_s5 + $0x78] sm:$0xff] %v1418_v52 }
  0xfa   : > { %v1106_v40 = vmax.f32 %v1073_v56, 0.0  ;;  %v1130_v62 = vmin.f32 %v1098_v61, 6.0 }
  0xfc   : > { %v1138_v63 = vmin.f32 %v1106_v40, 6.0  ;;  %v1426_v3 = vadd.f32 -1.1, %v1130_v62 }
  0xfe   : > { %v1434_v4 = vadd.f32 -1.1, %v1138_v63  ;;  %1194 = vst [vmem:[%s1802_s5 + $0xb8] sm:$0xff] %v1426_v3 }
 0x100   : > { %1202 = vst [vmem:[%s1802_s5 + $0xf8] sm:$0xff] %v1434_v4 }
 0x101 PF: > { %s19_s19 = sadd.s32 1, %s1526_s19   ;;  %s1872_s17 = smov %s1522_s18 }
 0x102   : > { %p16_p5 = scmp.ge.s32.totalorder %s19_s19, 4   ;;  %s1873_s18 = smov %s1875_s3 }
 0x104   :  { %18 = sbr.rel (!%p16_p5) target bundleno = 3 (0x3), region = 80 }

</bundles_post_ra>
